<compile_context>
chip_gen: v7x
topology: tpu7x:2x2x1
jax: 0.10.0
libtpu: 0.0.40
codegen_flags: <defaults>
</compile_context>

<pallas_src>
import functools

import jax
import jax.numpy as jnp
from jax.experimental import pallas as pl
from jax.experimental.pallas import tpu as pltpu


# ----------------------------- Pallas kernel --------------------------------

def _thalamic_branch_kernel(x_ref, v_ref, w_ref, wr_ref, b_ref, o_ref, *,
                            l_src, l_dst, tile_l):
    """out = W @ x + Wr @ (v resized along time) + b  for one (batch, L-tile).

    Layout: feature dim on sublanes, time on the 128-lane axis.
      x_ref  : (D, tile_l)   self input tile
      v_ref  : (C, l_src)    raw counterpart, whole sequence for this batch
      w_ref  : (D, D)        torch Linear weight (y = W @ z over the channel dim)
      wr_ref : (D, C)        W with the nearest channel-resize folded in (W @ R)
      b_ref  : (D, 1)
      o_ref  : (D, tile_l)
    """
    j = pl.program_id(1)

    # Nearest-neighbor time resize as a one-hot selection matrix built from
    # iota (no HBM traffic, no gather op):
    #   csel[s, t] = 1  iff  s == floor((j*tile_l + t) * l_src / l_dst)
    # expressed with multiplies/compares only (no elementwise integer divide).
    # Columns past l_dst (ragged boundary tile) produce garbage output columns
    # that Pallas discards on the masked boundary store.
    dst = jax.lax.broadcasted_iota(jnp.int32, (l_src, tile_l), 1) + j * tile_l
    src = jax.lax.broadcasted_iota(jnp.int32, (l_src, tile_l), 0)
    dst_scaled = dst * l_src
    csel = jnp.logical_and(src * l_dst <= dst_scaled,
                           dst_scaled < (src + 1) * l_dst)
    csel = csel.astype(v_ref.dtype)                                 # (l_src, tile_l)

    # Counterpart resized along time (one-hot matmul == exact column selection).
    sv = jnp.dot(v_ref[...], csel,
                 preferred_element_type=jnp.float32)                # (C, tile_l)

    y = jnp.dot(w_ref[...], x_ref[...],
                preferred_element_type=jnp.float32)                 # (D, tile_l)
    y = y + jnp.dot(wr_ref[...], sv.astype(wr_ref.dtype),
                    preferred_element_type=jnp.float32)
    y = y + b_ref[...].astype(jnp.float32)
    o_ref[...] = y.astype(o_ref.dtype)


def _pick_time_tile(l, max_tile=512):
    """Lane-axis tile: full extent when small; otherwise the largest multiple
    of 128 (<= max_tile) that divides l, falling back to max_tile with a
    ceil-div grid (boundary tile is padded/masked by Pallas)."""
    if l <= max_tile:
        return l
    if l % 128 == 0:
        for t in range(max_tile, 0, -128):
            if l % t == 0:
                return t
    return max_tile


def _fused_branch(x, v, w, wr, b):
    """x: [B, D, l_dst] self; v: [B, C, l_src] raw counterpart;
    w: [D, D]; wr: [D, C]; b: [D, 1].  Returns [B, D, l_dst]."""
    B, D, l_dst = x.shape
    _, C, l_src = v.shape
    tl = _pick_time_tile(l_dst)
    n_l = pl.cdiv(l_dst, tl)

    kernel = functools.partial(_thalamic_branch_kernel,
                               l_src=l_src, l_dst=l_dst, tile_l=tl)

    elt = jnp.dtype(x.dtype).itemsize
    flops = 2 * B * l_dst * (D * D + D * C) + 2 * B * C * l_src * l_dst
    bytes_accessed = elt * (2 * B * D * l_dst + B * C * l_src
                            + D * D + D * C + D)
    cost = pl.CostEstimate(flops=flops, transcendentals=0,
                           bytes_accessed=bytes_accessed)

    # VMEM budget: double-buffered x/out blocks, pinned counterpart + weights,
    # and the in-kernel f32 temporaries (csel, sv, y). 2x headroom, clamped
    # below v7x's 64 MiB physical VMEM.
    vmem_est = elt * (2 * 2 * D * tl          # x + out, double buffered
                      + 2 * C * l_src         # counterpart (double buffered)
                      + D * D + D * C + D)    # weights + bias, pinned
    vmem_est += 4 * (l_src * tl + C * tl + 2 * D * tl)
    vmem_limit = int(min(56 * 1024 * 1024, max(32 * 1024 * 1024, 2 * vmem_est)))

    return pl.pallas_call(
        kernel,
        out_shape=jax.ShapeDtypeStruct((B, D, l_dst), x.dtype),
        grid=(B, n_l),
        in_specs=[
            pl.BlockSpec((None, D, tl), lambda i, j: (i, 0, j)),
            # Raw counterpart for batch i: block index is constant across the
            # inner L-tile axis, so it is DMA'd once per batch and then reused.
            pl.BlockSpec((None, C, l_src), lambda i, j: (i, 0, 0)),
            # Weights / bias: constant block index -> fetched once, pinned.
            pl.BlockSpec((D, D), lambda i, j: (0, 0)),
            pl.BlockSpec((D, C), lambda i, j: (0, 0)),
            pl.BlockSpec((D, 1), lambda i, j: (0, 0)),
        ],
        out_specs=pl.BlockSpec((None, D, tl), lambda i, j: (i, 0, j)),
        compiler_params=pltpu.CompilerParams(
            dimension_semantics=("parallel", "parallel"),
            vmem_limit_bytes=vmem_limit,
        ),
        cost_estimate=cost,
    )(x, v, w, wr, b)


# ------------------------------- JAX glue ------------------------------------

def _fold_channel_resize(w, c_src):
    """Wr = W @ R with R[m, c] = 1 iff c == floor(m * c_src / D_in): folds the
    nearest-neighbor channel resize of the counterpart into the weight (tiny,
    trace-time, D x C)."""
    d_in = w.shape[1]
    rowmap = (jnp.arange(d_in) * c_src) // d_in
    onehot = (rowmap[:, None] == jnp.arange(c_src)[None, :]).astype(w.dtype)
    return w @ onehot


@jax.jit
def thalamic_sub(audio_emb, video_emb, wa, ba, wv, bv):
    """audio_emb: [B, audio_dim, audio_len]; video_emb: [B, video_dim, video_len].
    wa: [audio_dim, audio_dim], ba: [audio_dim]; wv/bv likewise (torch Linear)."""
    _, N, _ = audio_emb.shape
    _, C, _ = video_emb.shape

    wra = _fold_channel_resize(wa, C)          # (N, C)
    wrv = _fold_channel_resize(wv, N)          # (C, N)

    out_a = _fused_branch(audio_emb, video_emb, wa, wra, ba.reshape(N, 1))
    out_v = _fused_branch(video_emb, audio_emb, wv, wrv, bv.reshape(C, 1))
    return out_a, out_v


# ------------------------------ reference ------------------------------------

def nearest_resize_2d(x, out_h, out_w):
    """PyTorch F.interpolate(mode='nearest') over the last two dims of [B, H, W]."""
    _, H, W = x.shape
    ri = (jnp.arange(out_h) * H) // out_h
    ci = (jnp.arange(out_w) * W) // out_w
    return x[:, ri[:, None], ci[None, :]]


def reference(audio_emb, video_emb, wa, ba, wv, bv):
    """Pure-jnp reference mirroring the torch forward."""
    B, N, La = audio_emb.shape
    _, C, Lv = video_emb.shape
    scaled_video = nearest_resize_2d(video_emb, N, La)
    scaled_audio = nearest_resize_2d(audio_emb, C, Lv)
    a = jnp.transpose(audio_emb + scaled_video, (0, 2, 1)) @ wa.T + ba
    v = jnp.transpose(video_emb + scaled_audio, (0, 2, 1)) @ wv.T + bv
    return jnp.transpose(a, (0, 2, 1)), jnp.transpose(v, (0, 2, 1))


# --------------------------------- main --------------------------------------

if __name__ == "__main__":
    key = jax.random.PRNGKey(0)
    k1, k2, k3, k4, k5, k6 = jax.random.split(key, 6)

    B = 2
    audio_dim, audio_len = 16, 96     # audio_emb: [B, audio_dim, audio_len]
    video_dim, video_len = 32, 24     # video_emb: [B, video_dim, video_len]

    audio_emb = jax.random.normal(k1, (B, audio_dim, audio_len), jnp.float32)
    video_emb = jax.random.normal(k2, (B, video_dim, video_len), jnp.float32)

    # Deterministic parameter init (matching torch.nn.Linear's uniform range).
    bound_a = 1.0 / (audio_dim ** 0.5)
    bound_v = 1.0 / (video_dim ** 0.5)
    wa = jax.random.uniform(k3, (audio_dim, audio_dim), jnp.float32, -bound_a, bound_a)
    ba = jax.random.uniform(k4, (audio_dim,), jnp.float32, -bound_a, bound_a)
    wv = jax.random.uniform(k5, (video_dim, video_dim), jnp.float32, -bound_v, bound_v)
    bv = jax.random.uniform(k6, (video_dim,), jnp.float32, -bound_v, bound_v)

    out_a, out_v = thalamic_sub(audio_emb, video_emb, wa, ba, wv, bv)
    jax.block_until_ready((out_a, out_v))

    ref_a, ref_v = reference(audio_emb, video_emb, wa, ba, wv, bv)
    assert out_a.shape == (B, audio_dim, audio_len)
    assert out_v.shape == (B, video_dim, video_len)
    err_a = float(jnp.max(jnp.abs(out_a - ref_a)))
    err_v = float(jnp.max(jnp.abs(out_v - ref_v)))
    assert jnp.allclose(out_a, ref_a, atol=1e-4, rtol=1e-4), err_a
    assert jnp.allclose(out_v, ref_v, atol=1e-4, rtol=1e-4), err_v

    print("KERNEL_OK")
</pallas_src>

<mosaic_0001>
module attributes {stable_mosaic.version = 11 : i64} {
  func.func @_thalamic_branch_kernel(%arg0: i32, %arg1: i32, %arg2: memref<1x32x24xf32, #tpu.memory_space<vmem>>, %arg3: memref<1x16x96xf32, #tpu.memory_space<vmem>>, %arg4: memref<32x32xf32, #tpu.memory_space<vmem>>, %arg5: memref<32x16xf32, #tpu.memory_space<vmem>>, %arg6: memref<32x1xf32, #tpu.memory_space<vmem>>, %arg7: memref<1x32x24xf32, #tpu.memory_space<vmem>>) attributes {dimension_semantics = [#tpu.dimension_semantics<parallel>, #tpu.dimension_semantics<parallel>], iteration_bounds = array<i64: 2, 1>, scalar_prefetch = 0 : i64, scratch_operands = 0 : i64, tpu.core_type = #tpu.core_type<tc>, window_params = [{transform_indices = @transform_0, window_bounds = array<i64: 1, 32, 24>}, {transform_indices = @transform_1, window_bounds = array<i64: 1, 16, 96>}, {pipeline_mode = #tpu.pipeline_mode<synchronous>, transform_indices = @transform_2, window_bounds = array<i64: 32, 32>}, {pipeline_mode = #tpu.pipeline_mode<synchronous>, transform_indices = @transform_3, window_bounds = array<i64: 32, 16>}, {pipeline_mode = #tpu.pipeline_mode<synchronous>, transform_indices = @transform_4, window_bounds = array<i64: 32, 1>}, {transform_indices = @transform_5, window_bounds = array<i64: 1, 32, 24>}]} {
    %0 = tpu.iota {dimensions = array<i32: 1>} : vector<96x24xi32>
    %c24_i32 = arith.constant 24 : i32
    %1 = arith.muli %arg1, %c24_i32 : i32
    %2 = vector.broadcast %1 : i32 to vector<96x24xi32>
    %3 = arith.addi %0, %2 : vector<96x24xi32>
    %4 = tpu.iota {dimensions = array<i32: 0>} : vector<96x24xi32>
    %c96_i32 = arith.constant 96 : i32
    %5 = vector.broadcast %c96_i32 : i32 to vector<96x24xi32>
    %6 = arith.muli %3, %5 : vector<96x24xi32>
    %c24_i32_0 = arith.constant 24 : i32
    %7 = vector.broadcast %c24_i32_0 : i32 to vector<96x24xi32>
    %8 = arith.muli %4, %7 : vector<96x24xi32>
    %9 = arith.cmpi sle, %8, %6 : vector<96x24xi32>
    %c1_i32 = arith.constant 1 : i32
    %10 = vector.broadcast %c1_i32 : i32 to vector<96x24xi32>
    %11 = arith.addi %4, %10 : vector<96x24xi32>
    %c24_i32_1 = arith.constant 24 : i32
    %12 = vector.broadcast %c24_i32_1 : i32 to vector<96x24xi32>
    %13 = arith.muli %11, %12 : vector<96x24xi32>
    %14 = arith.cmpi slt, %6, %13 : vector<96x24xi32>
    %15 = arith.andi %9, %14 : vector<96x24xi1>
    %16 = arith.extui %15 : vector<96x24xi1> to vector<96x24xi32>
    %17 = arith.sitofp %16 : vector<96x24xi32> to vector<96x24xf32>
    %c0 = arith.constant 0 : index
    %c0_2 = arith.constant 0 : index
    %c0_3 = arith.constant 0 : index
    %18 = vector.load %arg3[%c0, %c0_2, %c0_3] : memref<1x16x96xf32, #tpu.memory_space<vmem>>, vector<1x16x96xf32>
    %19 = vector.shape_cast %18 : vector<1x16x96xf32> to vector<16x96xf32>
    %cst = arith.constant dense<0.000000e+00> : vector<16x24xf32>
    %20 = tpu.matmul %19, %17, %cst {dimension_numbers = #tpu.dot_dimension_numbers<[1], [0], [0], [1], [0, 0, 1, 1], [], []>} : vector<16x96xf32>, vector<96x24xf32>, vector<16x24xf32> -> vector<16x24xf32>
    %c0_4 = arith.constant 0 : index
    %c0_5 = arith.constant 0 : index
    %21 = vector.load %arg4[%c0_4, %c0_5] : memref<32x32xf32, #tpu.memory_space<vmem>>, vector<32x32xf32>
    %c0_6 = arith.constant 0 : index
    %c0_7 = arith.constant 0 : index
    %c0_8 = arith.constant 0 : index
    %22 = vector.load %arg2[%c0_6, %c0_7, %c0_8] : memref<1x32x24xf32, #tpu.memory_space<vmem>>, vector<1x32x24xf32>
    %23 = vector.shape_cast %22 : vector<1x32x24xf32> to vector<32x24xf32>
    %cst_9 = arith.constant dense<0.000000e+00> : vector<32x24xf32>
    %24 = tpu.matmul %21, %23, %cst_9 {dimension_numbers = #tpu.dot_dimension_numbers<[1], [0], [0], [1], [0, 0, 1, 1], [], []>} : vector<32x32xf32>, vector<32x24xf32>, vector<32x24xf32> -> vector<32x24xf32>
    %c0_10 = arith.constant 0 : index
    %c0_11 = arith.constant 0 : index
    %25 = vector.load %arg5[%c0_10, %c0_11] : memref<32x16xf32, #tpu.memory_space<vmem>>, vector<32x16xf32>
    %cst_12 = arith.constant dense<0.000000e+00> : vector<32x24xf32>
    %26 = tpu.matmul %25, %20, %cst_12 {dimension_numbers = #tpu.dot_dimension_numbers<[1], [0], [0], [1], [0, 0, 1, 1], [], []>} : vector<32x16xf32>, vector<16x24xf32>, vector<32x24xf32> -> vector<32x24xf32>
    %27 = arith.addf %24, %26 : vector<32x24xf32>
    %c0_13 = arith.constant 0 : index
    %c0_14 = arith.constant 0 : index
    %28 = vector.load %arg6[%c0_13, %c0_14] : memref<32x1xf32, #tpu.memory_space<vmem>>, vector<32x1xf32>
    %29 = vector.broadcast %28 : vector<32x1xf32> to vector<32x24xf32>
    %30 = arith.addf %27, %29 : vector<32x24xf32>
    %c0_15 = arith.constant 0 : index
    %c0_16 = arith.constant 0 : index
    %c0_17 = arith.constant 0 : index
    %31 = vector.load %arg7[%c0_15, %c0_16, %c0_17] : memref<1x32x24xf32, #tpu.memory_space<vmem>>, vector<1x32x24xf32>
    %32 = vector.shape_cast %31 : vector<1x32x24xf32> to vector<32x24xf32>
    %33 = vector.shape_cast %30 : vector<32x24xf32> to vector<1x32x24xf32>
    tpu.vector_store %arg7[%c0_15, %c0_16, %c0_17], %33 {strides = array<i32>} : memref<1x32x24xf32, #tpu.memory_space<vmem>>, vector<1x32x24xf32>,
    return
  }
  func.func @transform_0(%arg0: i32, %arg1: i32) -> (i32, i32, i32) {
    %c0_i32 = arith.constant 0 : i32
    %c0_i32_0 = arith.constant 0 : i32
    return %arg0, %c0_i32, %arg1 : i32, i32, i32
  }
  func.func @transform_1(%arg0: i32, %arg1: i32) -> (i32, i32, i32) {
    %c0_i32 = arith.constant 0 : i32
    %c0_i32_0 = arith.constant 0 : i32
    %c0_i32_1 = arith.constant 0 : i32
    return %arg0, %c0_i32, %c0_i32_0 : i32, i32, i32
  }
  func.func @transform_2(%arg0: i32, %arg1: i32) -> (i32, i32) {
    %c0_i32 = arith.constant 0 : i32
    %c0_i32_0 = arith.constant 0 : i32
    %c0_i32_1 = arith.constant 0 : i32
    return %c0_i32, %c0_i32_0 : i32, i32
  }
  func.func @transform_3(%arg0: i32, %arg1: i32) -> (i32, i32) {
    %c0_i32 = arith.constant 0 : i32
    %c0_i32_0 = arith.constant 0 : i32
    %c0_i32_1 = arith.constant 0 : i32
    return %c0_i32, %c0_i32_0 : i32, i32
  }
  func.func @transform_4(%arg0: i32, %arg1: i32) -> (i32, i32) {
    %c0_i32 = arith.constant 0 : i32
    %c0_i32_0 = arith.constant 0 : i32
    %c0_i32_1 = arith.constant 0 : i32
    return %c0_i32, %c0_i32_0 : i32, i32
  }
  func.func @transform_5(%arg0: i32, %arg1: i32) -> (i32, i32, i32) {
    %c0_i32 = arith.constant 0 : i32
    %c0_i32_0 = arith.constant 0 : i32
    return %arg0, %c0_i32, %arg1 : i32, i32, i32
  }
}

module attributes {stable_mosaic.version = 11 : i64} {
  func.func @_thalamic_branch_kernel(%arg0: i32, %arg1: i32, %arg2: memref<1x16x96xf32, #tpu.memory_space<vmem>>, %arg3: memref<1x32x24xf32, #tpu.memory_space<vmem>>, %arg4: memref<16x16xf32, #tpu.memory_space<vmem>>, %arg5: memref<16x32xf32, #tpu.memory_space<vmem>>, %arg6: memref<16x1xf32, #tpu.memory_space<vmem>>, %arg7: memref<1x16x96xf32, #tpu.memory_space<vmem>>) attributes {dimension_semantics = [#tpu.dimension_semantics<parallel>, #tpu.dimension_semantics<parallel>], iteration_bounds = array<i64: 2, 1>, scalar_prefetch = 0 : i64, scratch_operands = 0 : i64, tpu.core_type = #tpu.core_type<tc>, window_params = [{transform_indices = @transform_0, window_bounds = array<i64: 1, 16, 96>}, {transform_indices = @transform_1, window_bounds = array<i64: 1, 32, 24>}, {pipeline_mode = #tpu.pipeline_mode<synchronous>, transform_indices = @transform_2, window_bounds = array<i64: 16, 16>}, {pipeline_mode = #tpu.pipeline_mode<synchronous>, transform_indices = @transform_3, window_bounds = array<i64: 16, 32>}, {pipeline_mode = #tpu.pipeline_mode<synchronous>, transform_indices = @transform_4, window_bounds = array<i64: 16, 1>}, {transform_indices = @transform_5, window_bounds = array<i64: 1, 16, 96>}]} {
    %0 = tpu.iota {dimensions = array<i32: 1>} : vector<24x96xi32>
    %c96_i32 = arith.constant 96 : i32
    %1 = arith.muli %arg1, %c96_i32 : i32
    %2 = vector.broadcast %1 : i32 to vector<24x96xi32>
    %3 = arith.addi %0, %2 : vector<24x96xi32>
    %4 = tpu.iota {dimensions = array<i32: 0>} : vector<24x96xi32>
    %c24_i32 = arith.constant 24 : i32
    %5 = vector.broadcast %c24_i32 : i32 to vector<24x96xi32>
    %6 = arith.muli %3, %5 : vector<24x96xi32>
    %c96_i32_0 = arith.constant 96 : i32
    %7 = vector.broadcast %c96_i32_0 : i32 to vector<24x96xi32>
    %8 = arith.muli %4, %7 : vector<24x96xi32>
    %9 = arith.cmpi sle, %8, %6 : vector<24x96xi32>
    %c1_i32 = arith.constant 1 : i32
    %10 = vector.broadcast %c1_i32 : i32 to vector<24x96xi32>
    %11 = arith.addi %4, %10 : vector<24x96xi32>
    %c96_i32_1 = arith.constant 96 : i32
    %12 = vector.broadcast %c96_i32_1 : i32 to vector<24x96xi32>
    %13 = arith.muli %11, %12 : vector<24x96xi32>
    %14 = arith.cmpi slt, %6, %13 : vector<24x96xi32>
    %15 = arith.andi %9, %14 : vector<24x96xi1>
    %16 = arith.extui %15 : vector<24x96xi1> to vector<24x96xi32>
    %17 = arith.sitofp %16 : vector<24x96xi32> to vector<24x96xf32>
    %c0 = arith.constant 0 : index
    %c0_2 = arith.constant 0 : index
    %c0_3 = arith.constant 0 : index
    %18 = vector.load %arg3[%c0, %c0_2, %c0_3] : memref<1x32x24xf32, #tpu.memory_space<vmem>>, vector<1x32x24xf32>
    %19 = vector.shape_cast %18 : vector<1x32x24xf32> to vector<32x24xf32>
    %cst = arith.constant dense<0.000000e+00> : vector<32x96xf32>
    %20 = tpu.matmul %19, %17, %cst {dimension_numbers = #tpu.dot_dimension_numbers<[1], [0], [0], [1], [0, 0, 1, 1], [], []>} : vector<32x24xf32>, vector<24x96xf32>, vector<32x96xf32> -> vector<32x96xf32>
    %c0_4 = arith.constant 0 : index
    %c0_5 = arith.constant 0 : index
    %21 = vector.load %arg4[%c0_4, %c0_5] : memref<16x16xf32, #tpu.memory_space<vmem>>, vector<16x16xf32>
    %c0_6 = arith.constant 0 : index
    %c0_7 = arith.constant 0 : index
    %c0_8 = arith.constant 0 : index
    %22 = vector.load %arg2[%c0_6, %c0_7, %c0_8] : memref<1x16x96xf32, #tpu.memory_space<vmem>>, vector<1x16x96xf32>
    %23 = vector.shape_cast %22 : vector<1x16x96xf32> to vector<16x96xf32>
    %cst_9 = arith.constant dense<0.000000e+00> : vector<16x96xf32>
    %24 = tpu.matmul %21, %23, %cst_9 {dimension_numbers = #tpu.dot_dimension_numbers<[1], [0], [0], [1], [0, 0, 1, 1], [], []>} : vector<16x16xf32>, vector<16x96xf32>, vector<16x96xf32> -> vector<16x96xf32>
    %c0_10 = arith.constant 0 : index
    %c0_11 = arith.constant 0 : index
    %25 = vector.load %arg5[%c0_10, %c0_11] : memref<16x32xf32, #tpu.memory_space<vmem>>, vector<16x32xf32>
    %cst_12 = arith.constant dense<0.000000e+00> : vector<16x96xf32>
    %26 = tpu.matmul %25, %20, %cst_12 {dimension_numbers = #tpu.dot_dimension_numbers<[1], [0], [0], [1], [0, 0, 1, 1], [], []>} : vector<16x32xf32>, vector<32x96xf32>, vector<16x96xf32> -> vector<16x96xf32>
    %27 = arith.addf %24, %26 : vector<16x96xf32>
    %c0_13 = arith.constant 0 : index
    %c0_14 = arith.constant 0 : index
    %28 = vector.load %arg6[%c0_13, %c0_14] : memref<16x1xf32, #tpu.memory_space<vmem>>, vector<16x1xf32>
    %29 = vector.broadcast %28 : vector<16x1xf32> to vector<16x96xf32>
    %30 = arith.addf %27, %29 : vector<16x96xf32>
    %c0_15 = arith.constant 0 : index
    %c0_16 = arith.constant 0 : index
    %c0_17 = arith.constant 0 : index
    %31 = vector.load %arg7[%c0_15, %c0_16, %c0_17] : memref<1x16x96xf32, #tpu.memory_space<vmem>>, vector<1x16x96xf32>
    %32 = vector.shape_cast %31 : vector<1x16x96xf32> to vector<16x96xf32>
    %33 = vector.shape_cast %30 : vector<16x96xf32> to vector<1x16x96xf32>
    tpu.vector_store %arg7[%c0_15, %c0_16, %c0_17], %33 {strides = array<i32>} : memref<1x16x96xf32, #tpu.memory_space<vmem>>, vector<1x16x96xf32>,
    return
  }
  func.func @transform_0(%arg0: i32, %arg1: i32) -> (i32, i32, i32) {
    %c0_i32 = arith.constant 0 : i32
    %c0_i32_0 = arith.constant 0 : i32
    return %arg0, %c0_i32, %arg1 : i32, i32, i32
  }
  func.func @transform_1(%arg0: i32, %arg1: i32) -> (i32, i32, i32) {
    %c0_i32 = arith.constant 0 : i32
    %c0_i32_0 = arith.constant 0 : i32
    %c0_i32_1 = arith.constant 0 : i32
    return %arg0, %c0_i32, %c0_i32_0 : i32, i32, i32
  }
  func.func @transform_2(%arg0: i32, %arg1: i32) -> (i32, i32) {
    %c0_i32 = arith.constant 0 : i32
    %c0_i32_0 = arith.constant 0 : i32
    %c0_i32_1 = arith.constant 0 : i32
    return %c0_i32, %c0_i32_0 : i32, i32
  }
  func.func @transform_3(%arg0: i32, %arg1: i32) -> (i32, i32) {
    %c0_i32 = arith.constant 0 : i32
    %c0_i32_0 = arith.constant 0 : i32
    %c0_i32_1 = arith.constant 0 : i32
    return %c0_i32, %c0_i32_0 : i32, i32
  }
  func.func @transform_4(%arg0: i32, %arg1: i32) -> (i32, i32) {
    %c0_i32 = arith.constant 0 : i32
    %c0_i32_0 = arith.constant 0 : i32
    %c0_i32_1 = arith.constant 0 : i32
    return %c0_i32, %c0_i32_0 : i32, i32
  }
  func.func @transform_5(%arg0: i32, %arg1: i32) -> (i32, i32, i32) {
    %c0_i32 = arith.constant 0 : i32
    %c0_i32_0 = arith.constant 0 : i32
    return %arg0, %c0_i32, %arg1 : i32, i32, i32
  }
}

</mosaic_0001>

<bundles_post_ra>
// kernel: thalamic_sub.3
= control target key start
LH: loop header
LB: loop body
LE: loop exit
PB: predicated region body
PF: predicated region fallthrough
CT: control target
= control target key end

     0   :  { %s1064_s18 = smov 0   ;;  %s1066_s19 = smov 0   ;;  %s1323_s0 = inlined_call_operand.vmem [shape: f32[2,32,24], index: 0, kind: input, shape index: {}]   ;;  %s1324_s1 = inlined_call_operand.vmem [shape: f32[2,16,96], index: 1, kind: input, shape index: {}]   ;;  %s1325_s2 = inlined_call_operand.vmem [shape: f32[32,32], index: 2, kind: input, shape index: {}]   ;;  %s1326_s3 = inlined_call_operand.vmem [shape: f32[32,16], index: 3, kind: input, shape index: {}]   ;;  %s1327_s4 = inlined_call_operand.vmem [shape: f32[32,1], index: 4, kind: input, shape index: {}]   ;;  %s1328_s5 = inlined_call_operand.vmem [shape: f32[2,32,24], index: 5, kind: output, shape index: {}]  }
   0x1   :  { %s1068_s20 = smov 0  }
   0x2 LB: > { %s27_s21 = sadd.s32 1, %s1026_s19  ;;  %p815_p0 = scmp.ge.s32.totalorder %s1030_s20, 1  ;;  %s1030_s20 = sphi %s1068_s20, %s15_s20   ;;  %s1026_s19 = sphi %s1066_s19, %s1368_s19   ;;  %s1022_s18 = sphi %s1064_s18, %s1367_s18  }
   0x3   : > { %p29_p1 = scmp.ge.s32.totalorder %s27_s21, 2  ;;  %p216_p2 = scmp.lt.s32.totalorder %s1030_s20, 3 }
   0x5   : > { %s1370_s21 = smov (%p29_p1, %s27_s21), 0  ;;  %p217_p3 = pnand %p815_p0, %p216_p2 }
   0x6   : > { %v276_v0 = vlaneseq (!%p217_p3)  ;;  %p255_p4 = scmp.lt.s32.totalorder (!%p217_p3), %s1022_s18, 1  ;;  %vm393_vm0 = vcmask (!%p217_p3), 785408   ;;  %v1032_v38 = vmov (!%p217_p3), 1.0|1.0   ;;  %v1033_v12 = vmov (!%p217_p3), 0   ;;  %v485_v24 = vld [vmem:[%s1326_s3 + $0x10] sm:$0xff] (!%p217_p3) }
   0x7   : > { %220 = sbr.rel (%p217_p3) target bundleno = 490 (0x1ea), region = 40  ;;  %1006 = vset.pattern.permute.xlu0 (!%p217_p3), %v1033_v12  ;;  %1007 = vset.pattern.permute.xlu1 (!%p217_p3), %v1033_v12  ;;  %v475_v27 = vld [vmem:[%s1325_s2] sm:$0xff] (!%p217_p3)  ;;  %v478_v30 = vld [vmem:[%s1325_s2 + $0x18] sm:$0xff] (!%p217_p3) }
   0x8   : > { %v277_v1 = vand.u32 (!%p217_p3), 127, %v276_v0  ;;  %v1082_v2 = vshrl.u32 (!%p217_p3), %v276_v0, 7 }
   0xa   : > { %v283_v3 = vadd.s32 (!%p217_p3), 8, %v1082_v2  ;;  %v1087_v4 = vmul.u32 (!%p217_p3), 96, %v277_v1  ;;  %v295_v5 = vmul.u32 (!%p217_p3), 24, %v1082_v2  ;;  %v319_v6 = vadd.s32 (!%p217_p3), 1, %v1082_v2 }
   0xb   : > { %v284_v7 = vadd.s32 (!%p217_p3), 16, %v1082_v2  ;;  %v285_v8 = vadd.s32 (!%p217_p3), 24, %v1082_v2  ;;  %v286_v9 = vadd.s32 (!%p217_p3), 32, %v1082_v2  ;;  %v287_v10 = vadd.s32 (!%p217_p3), 40, %v1082_v2 }
   0xc   : > { %v296_v11 = vmul.u32 (!%p217_p3), 24, %v283_v3  ;;  %vm1102_vm1 = vcmp.le.s32.totalorder (!%p217_p3), %v295_v5, %v1087_v4  ;;  %v320_v13 = vadd.s32 (!%p217_p3), 1, %v283_v3  ;;  %v331_v14 = vmul.u32 (!%p217_p3), 24, %v319_v6 }
   0xd   : > { %v297_v16 = vmul.u32 (!%p217_p3), 24, %v284_v7  ;;  %v298_v17 = vmul.u32 (!%p217_p3), 24, %v285_v8  ;;  %v321_v18 = vadd.s32 (!%p217_p3), 1, %v284_v7  ;;  %v322_v19 = vadd.s32 (!%p217_p3), 1, %v285_v8 }
   0xe   : > { %s1372_s18 = smov (!%p255_p4, %s1022_s18), 1  ;;  %vm1109_vm2 = vcmp.le.s32.totalorder %v296_v11, %v1087_v4  ;;  %v332_v21 = vmul.u32 24, %v320_v13  ;;  %vm1114_vm3 = vcmp.lt.s32.totalorder %v1087_v4, %v331_v14  ;;  %v299_v23 = vmul.u32 24, %v286_v9  ;;  %v685_v11 = vld [vmem:[%s1327_s4 + $0x10] sm:$0xff]  ;;  %v684_v13 = vld [vmem:[%s1327_s4 + $0x8] sm:$0xff]  ;;  %v686_v14 = vld [vmem:[%s1327_s4 + $0x18] sm:$0xff] }
   0xf   : > { %s859_s22 = sshll.u32 %s1372_s18, 4  ;;  %vm355_vm4 = vmand %vm1102_vm1, %vm1114_vm3  ;;  %vm1123_vm5 = vcmp.le.s32.totalorder %v297_v16, %v1087_v4  ;;  %v333_v25 = vmul.u32 24, %v321_v18  ;;  %v334_v26 = vmul.u32 24, %v322_v19  ;;  %vm1129_vm7 = vcmp.le.s32.totalorder %v298_v17, %v1087_v4  ;;  %699 = vperm.xlu1 %1007, %v685_v11   ;;  %s858_s11 = sshll.u32 %s1372_s18, 5 }
  0x10   : > { %s1099_s25 = scalar_lea.vmem %s1324_s1, %s859_s22  ;;  %vm344_vm6 = vcmp.lt.s32.totalorder %v1087_v4, %v332_v21  ;;  %v300_v28 = vmul.u32 24, %v287_v10  ;;  %v323_v29 = vadd.s32 1, %v286_v9  ;;  %v324_v32 = vadd.s32 1, %v287_v10  ;;  %v683_v10 = vld [vmem:[%s1327_s4] sm:$0xff]  ;;  %s262_s14 = scalar_lea.vmem %s1323_s0, %s858_s11 }
  0x11   : > { %v391_v15 = vld [vmem:[%s1099_s25] sm:$0xff]  ;;  %vm356_vm8 = vmand %vm1109_vm2, %vm344_vm6  ;;  %vm1136_vm9 = vcmp.lt.s32.totalorder %v1087_v4, %v333_v25  ;;  %vm1141_vm10 = vcmp.lt.s32.totalorder %v1087_v4, %v334_v26  ;;  %v288_v33 = vadd.s32 48, %v1082_v2  ;;  %vm1147_vm12 = vcmp.le.s32.totalorder %v299_v23, %v1087_v4  ;;  %v392_v9 = vld [vmem:[%s1099_s25 + $0x8] sm:$0xff]  ;;  %689 = vperm.xlu0 %1006, %v683_v10   ;;  %s275_s10 = scalar_lea.vmem %s1328_s5, %s858_s11 }
  0x12   : > { %913 = vmatprep.mubr.msk.f32.mxu0 %vm393_vm0, %v391_v15  ;;  %vm940_vm11 = vmpackc.low %vm356_vm8, %vm355_vm4  ;;  %v335_v35 = vmul.u32 24, %v323_v29  ;;  %v289_v36 = vadd.s32 56, %v1082_v2  ;;  %v290_v37 = vadd.s32 64, %v1082_v2  ;;  %v336_v39 = vmul.u32 24, %v324_v32  ;;  %v479_v15 = vld [vmem:[%s262_s14] sm:$0xff]  ;;  %v480_v16 = vld [vmem:[%s262_s14 + $0x8] sm:$0xff] }
  0x13   : > { %941 = vmatprep.subr.msk.bf16.mxu0 %vm940_vm11, %v1032_v38  ;;  %vm357_vm13 = vmand %vm1123_vm5, %vm1136_vm9  ;;  %v301_v40 = vmul.u32 24, %v288_v33  ;;  %v325_v41 = vadd.s32 1, %v288_v33  ;;  %v291_v42 = vadd.s32 72, %v1082_v2  ;;  %vm1165_vm15 = vcmp.le.s32.totalorder %v300_v28, %v1087_v4  ;;  %704 = vperm.xlu1 %1007, %v686_v14   ;;  %v481_v21 = vld [vmem:[%s262_s14 + $0x10] sm:$0xff]  ;;  %v482_v22 = vld [vmem:[%s262_s14 + $0x18] sm:$0xff] }
  0x14   : > { %943 = vmatpush3.bf16.msk.msra.mxu0 %vm940_vm11, %v1032_v38  ;;  %vm358_vm14 = vmand %vm1129_vm7, %vm1141_vm10  ;;  %vm1170_vm1 = vcmp.lt.s32.totalorder %v1087_v4, %v335_v35  ;;  %v302_v45 = vmul.u32 24, %v289_v36  ;;  %v326_v46 = vadd.s32 1, %v289_v36  ;;  %vm1175_vm3 = vcmp.lt.s32.totalorder %v1087_v4, %v336_v39  ;;  %v484_v23 = vld [vmem:[%s1326_s3 + $0x8] sm:$0xff]  ;;  %v486_v26 = vld [vmem:[%s1326_s3 + $0x18] sm:$0xff] }
  0x15   : > { %vm944_vm2 = vmpackc.low %vm358_vm14, %vm357_vm13  ;;  %v337_v48 = vmul.u32 24, %v325_v41  ;;  %v303_v49 = vmul.u32 24, %v290_v37  ;;  %vm1185_vm5 = vcmp.le.s32.totalorder %v301_v40, %v1087_v4  ;;  %v327_v53 = vadd.s32 1, %v290_v37  ;;  %694 = vperm.xlu0 %1006, %v684_v13   ;;  %v476_v28 = vld [vmem:[%s1325_s2 + $0x8] sm:$0xff]  ;;  %v477_v29 = vld [vmem:[%s1325_s2 + $0x10] sm:$0xff] }
  0x16   : > { %945 = vmatprep.subr.msk.bf16.mxu0 %vm944_vm2, %v1032_v38  ;;  %vm359_vm4 = vmand %vm1147_vm12, %vm1170_vm1  ;;  %v338_v51 = vmul.u32 24, %v326_v46  ;;  %v304_v52 = vmul.u32 24, %v291_v42  ;;  %vm1194_vm7 = vcmp.le.s32.totalorder %v302_v45, %v1087_v4  ;;  %v328_v56 = vadd.s32 1, %v291_v42 }
  0x17   : > { %vm360_vm6 = vmand %vm1165_vm15, %vm1175_vm3  ;;  %vm1199_vm8 = vcmp.lt.s32.totalorder %v1087_v4, %v337_v48  ;;  %v292_v57 = vadd.s32 80, %v1082_v2  ;;  %v339_v60 = vmul.u32 24, %v327_v53  ;;  %v293_v61 = vadd.s32 88, %v1082_v2 }
  0x18   : > { %947 = vmatpush3.bf16.msk.msra.mxu0 %vm944_vm2, %v1032_v38  ;;  %vm1205_vm9 = vmpackc.low %vm360_vm6, %vm359_vm4  ;;  %vm1210_vm10 = vcmp.lt.s32.totalorder %v1087_v4, %v338_v51  ;;  %vm1223_vm12 = vcmp.le.s32.totalorder %v303_v49, %v1087_v4  ;;  %v340_v63 = vmul.u32 24, %v328_v56  ;;  %vm1232_vm14 = vcmp.le.s32.totalorder %v304_v52, %v1087_v4 }
  0x19   : > { %949 = vmatprep.subr.msk.bf16.mxu0 %vm1205_vm9, %v1032_v38  ;;  %vm361_vm11 = vmand %vm1185_vm5, %vm1199_vm8  ;;  %v305_v0 = vmul.u32 24, %v292_v57  ;;  %v329_v1 = vadd.s32 1, %v292_v57  ;;  %vm1237_vm15 = vcmp.lt.s32.totalorder %v1087_v4, %v339_v60  ;;  %v306_v5 = vmul.u32 24, %v293_v61 }
  0x1a   : > { %vm362_vm13 = vmand %vm1194_vm7, %vm1210_vm10  ;;  %v330_v6 = vadd.s32 1, %v293_v61  ;;  %vm352_vm2 = vcmp.lt.s32.totalorder %v1087_v4, %v340_v63  ;;  %v968_v20 = vpack.c.bf16 %v480_v16, %v479_v15  ;;  %v972_v25 = vpack.c.bf16 %v482_v22, %v481_v21 }
  0x1b   : > { %vm952_vm1 = vmpackc.low %vm362_vm13, %vm361_vm11  ;;  %v341_v7 = vmul.u32 24, %v329_v1  ;;  %vm317_vm4 = vcmp.le.s32.totalorder %v305_v0, %v1087_v4  ;;  %vm318_vm6 = vcmp.le.s32.totalorder %v306_v5, %v1087_v4  ;;  %vm487_vm13 = vcmask 130048  }
  0x1c   : > { %951 = vmatpush3.bf16.msk.msra.mxu0 %vm1205_vm9, %v1032_v38  ;;  %vm363_vm3 = vmand %vm1223_vm12, %vm1237_vm15  ;;  %v342_v8 = vmul.u32 24, %v330_v6 }
  0x1d   : > { %953 = vmatprep.subr.msk.bf16.mxu0 %vm952_vm1, %v1032_v38  ;;  %vm364_vm5 = vmand %vm1232_vm14, %vm352_vm2  ;;  %vm353_vm7 = vcmp.lt.s32.totalorder %v1087_v4, %v341_v7  ;;  %vm711_vm14 = vcmask 195584  }
  0x1e   : > { %vm956_vm8 = vmpackc.low %vm364_vm5, %vm363_vm3  ;;  %vm354_vm9 = vcmp.lt.s32.totalorder %v1087_v4, %v342_v8  ;;  %v483_v4 = vld [vmem:[%s1326_s3] sm:$0xff] }
  0x1f   : > { %vm365_vm10 = vmand %vm317_vm4, %vm353_vm7  ;;  %920 = vmatprep.mubr.msk.f32.mxu1 %vm487_vm13, %v483_v4 }
  0x20   : > { %955 = vmatpush3.bf16.msk.msra.mxu0 %vm952_vm1, %v1032_v38  ;;  %vm366_vm11 = vmand %vm318_vm6, %vm354_vm9 }
  0x21   : > { %957 = vmatprep.subr.msk.bf16.mxu0 %vm956_vm8, %v1032_v38  ;;  %vm960_vm12 = vmpackc.low %vm366_vm11, %vm365_vm10 }
  0x24   : > { %959 = vmatpush3.bf16.msk.msra.mxu0 %vm956_vm8, %v1032_v38 }
  0x25   : > { %961 = vmatprep.subr.msk.bf16.mxu0 %vm960_vm12, %v1032_v38 }
  0x28   : > { %963 = vmatpush3.bf16.msk.msra.mxu0 %vm960_vm12, %v1032_v38 }
  0x2b   : > { %914 = vmatmul.mubr.msk.f32.vlgmr.msra.gmra.mrb[0].mxu0 %vm393_vm0, %v392_v9  ;;  %vm585_vm0 = vcmask 261120  }
  0x8e   : > { %v700_v32 = vpop.permute.xlu1 %699 }
  0x90   : > { %v690_v31 = vpop.permute.xlu0 %689 }
  0x92   : > { %v705_v38 = vpop.permute.xlu1 %704 }
  0x94   : > { %v695_v33 = vpop.permute.xlu0 %694 }
  0xfe   : > { %v915_v17 = vpop.f32.mrb[0].mxu0 }
  0xff   : > { %v466_v18 = vpop.f32.mrb[1].mxu0 }
 0x100   : > { %v964_v19 = vpack.c.bf16 %v915_v17, %v466_v18 }
 0x102   : > { %965 = vmatprep.subr.bf16.mxu1 %v964_v19 }
 0x103   : > { %967 = vmatpush3.bf16.msra.mxu1 %v964_v19 }
 0x104   : > { %969 = vmatprep.subr.bf16.mxu1 %v968_v20 }
 0x106   : > { %921 = vmatmul.mubr.msk.f32.vlgmr.msra.gmra.mrb[0].mxu1 %vm487_vm13, %v484_v23 }
 0x107   : > { %971 = vmatpush3.bf16.msra.mxu1 %v968_v20  ;;  %923 = vmatprep.mubr.msk.f32.mxu1 %vm487_vm13, %v485_v24 }
 0x108   : > { %973 = vmatprep.subr.bf16.mxu1 %v972_v25 }
 0x10a   : > { %924 = vmatmul.mubr.msk.f32.gmra.mrb[2].mxu1 %vm487_vm13, %v486_v26 }
 0x10b   : > { %975 = vmatpush3.bf16.msra.mxu1 %v972_v25  ;;  %934 = vmatprep.mubr.msk.f32.mxu1 %vm585_vm0, %v475_v27 }
 0x10e   : > { %935 = vmatmul.mubr.msk.f32.vlgmr.msra.gmra.mrb[0].mxu1 %vm585_vm0, %v476_v28 }
 0x10f   : > { %937 = vmatprep.mubr.msk.f32.mxu1 %vm585_vm0, %v477_v29 }
 0x112   : > { %938 = vmatmul.mubr.msk.f32.gmra.mrb[2].mxu1 %vm585_vm0, %v478_v30 }
 0x1e1   : > { %v936_v34 = vpop.f32.mrb[0].mxu1 }
 0x1e2   : > { %v708_v35 = vadd.f32 %v936_v34, %v695_v33  ;;  %v664_v36 = vpop.f32.mrb[1].mxu1 }
 0x1e3   : > { %v707_v37 = vadd.f32 %v690_v31, %v664_v36 }
 0x1e4   : > { %713 = vst.msk [vmem:[%s275_s10 + $0x8] sm:$0xff] %vm711_vm14, %v708_v35 }
 0x1e5   : > { %712 = vst.msk [vmem:[%s275_s10] sm:$0xff] %vm711_vm14, %v707_v37  ;;  %v939_v39 = vpop.f32.mrb[2].mxu1 }
 0x1e6   : > { %v710_v40 = vadd.f32 %v939_v39, %v705_v38  ;;  %v674_v41 = vpop.f32.mrb[3].mxu1 }
 0x1e7   : > { %v709_v42 = vadd.f32 %v700_v32, %v674_v41 }
 0x1e8   : > { %715 = vst.msk [vmem:[%s275_s10 + $0x18] sm:$0xff] %vm711_vm14, %v710_v40 }
 0x1e9   : > { %714 = vst.msk [vmem:[%s275_s10 + $0x10] sm:$0xff] %vm711_vm14, %v709_v42 }
 0x1ea PF: > { %s15_s20 = sadd.s32 1, %s1030_s20   ;;  %s1367_s18 = smov %s1026_s19 }
 0x1eb   : > { %p12_p5 = scmp.ge.s32.totalorder %s15_s20, 4   ;;  %s1368_s19 = smov %s1370_s21 }
 0x1ed   :  { %14 = sbr.rel (!%p12_p5) target bundleno = 2 (0x2), region = 73 }

// kernel: thalamic_sub.2
= control target key start
LH: loop header
LB: loop body
LE: loop exit
PB: predicated region body
PF: predicated region fallthrough
CT: control target
= control target key end

     0   :  { %10 = vsyncpa [#allocation3], 0  ;;  %s1122_s0 = inlined_call_operand.vmem [shape: f32[2,16,96], index: 0, kind: input, shape index: {}]   ;;  %s1123_s1 = inlined_call_operand.vmem [shape: f32[2,32,24], index: 1, kind: input, shape index: {}]   ;;  %s1124_s2 = inlined_call_operand.vmem [shape: f32[16,16], index: 2, kind: input, shape index: {}]   ;;  %s1125_s3 = inlined_call_operand.vmem [shape: f32[16,32], index: 3, kind: input, shape index: {}]   ;;  %s1126_s4 = inlined_call_operand.vmem [shape: f32[16,1], index: 4, kind: input, shape index: {}]   ;;  %s1127_s5 = inlined_call_operand.hbm [shape: f32[2,16,96], index: 5, kind: output, shape index: {}]  }
   0x1   :  { %12 = vsyncpa [#allocation3 + $0x1], 0  ;;  %s970_s18 = smov 0   ;;  %s972_s19 = smov 0  }
   0x2   :  { %s974_s20 = smov 0   ;;  %s976_s21 = smov 0  }
   0x3   :  { %s978_s22 = smov 0   ;;  %s980_s23 = smov 0  }
   0x4 LB: > { %s696_s24 = sadd.s32 4294967295, %s932_s23   ;;  %s697_s25 = sadd.s32 4294967294, %s932_s23   ;;  %s932_s23 = sphi %s980_s23, %s18_s23   ;;  %s928_s22 = sphi %s978_s22, %s1136_s22   ;;  %s924_s21 = sphi %s976_s21, %s1135_s21   ;;  %s920_s20 = sphi %s974_s20, %s1134_s20   ;;  %s916_s19 = sphi %s972_s19, %s1133_s19   ;;  %s912_s18 = sphi %s970_s18, %s1132_s18  }
   0x5   : > { %s30_s26 = sadd.s32 1, %s928_s22  ;;  %s156_s27 = sadd.s32 1, %s920_s20 }
   0x6   : > { %p32_p0 = scmp.ge.s32.totalorder %s30_s26, 2  ;;  %p166_p1 = scmp.ne.s32.totalorder %s920_s20, %s916_s19 }
   0x7   : > { %p167_p2 = scmp.eq.s32.totalorder %s696_s24, 1  ;;  %p172_p3 = scmp.ne.s32.totalorder %s916_s19, %s912_s18 }
   0x8   : > { %s1138_s26 = smov (%p32_p0, %s30_s26), 0  ;;  %p173_p5 = scmp.eq.s32.totalorder %s697_s25, 1 }
   0x9   : > { %p1010_p4 = por %p167_p2, %p166_p1  ;;  %s151_s29 = ssub.s32 %s928_s22, %s1138_s26 }
   0xa   : > { %p700_p6 = scmp.ge.s32.totalorder %s932_s23, 1  ;;  %p154_p7 = scmp.eq.s32.totalorder %s151_s29, 0 }
   0xb   : > { %p1017_p8 = por %p173_p5, %p172_p3  ;;  %p219_p9 = scmp.lt.s32.totalorder %s932_s23, 3 }
   0xc   : > { %s1023_s6 = scalar_select %p154_p7, %s920_s20, %s156_s27  }
   0xd   : > { %p220_p10 = pnand %p700_p6, %p219_p9 }
   0xe   : > { %v268_v0 = vlaneseq (!%p220_p10)  ;;  %p255_p11 = scmp.lt.s32.totalorder (!%p220_p10), %s924_s21, 1  ;;  %vm306_vm0 = vcmask (!%p220_p10), 195584   ;;  %v934_v17 = vmov (!%p220_p10), 1.0|1.0   ;;  %v935_v18 = vmov (!%p220_p10), 1.0   ;;  %v408_v22 = vld [vmem:[%s1125_s3] sm:$0xff] (!%p220_p10) }
   0xf   : > { %223 = sbr.rel (%p220_p10) target bundleno = 494 (0x1ee), region = 40  ;;  %vm410_vm11 = vcmask (!%p220_p10), 261120   ;;  %v574_v23 = vld [vmem:[%s1126_s4] sm:$0xff] (!%p220_p10)  ;;  %v936_v24 = vmov (!%p220_p10), 0   ;;  %v575_v25 = vld [vmem:[%s1126_s4 + $0x8] sm:$0xff] (!%p220_p10)  ;;  %vm492_vm12 = vcmask (!%p220_p10), 130048  }
  0x10   : > { %v269_v1 = vand.u32 (!%p220_p10), 127, %v268_v0  ;;  %v274_v2 = vshrl.u32 (!%p220_p10), %v268_v0, 7  ;;  %765 = vmatprep.mubr.msk.f32.mxu1 (!%p220_p10), %vm410_vm11, %v408_v22  ;;  %853 = vset.pattern.permute.xlu0 (!%p220_p10), %v936_v24  ;;  %v409_v35 = vld [vmem:[%s1125_s3 + $0x8] sm:$0xff] (!%p220_p10)  ;;  %v404_v36 = vld [vmem:[%s1124_s2] sm:$0xff] (!%p220_p10)  ;;  %s252_s13 = sand.u32 (!%p220_p10), 1, %s916_s19   ;;  %s727_s17 = sshll.u32 (!%p220_p10), %s924_s21, 8 }
  0x11   : > { %578 = vperm.xlu0 (!%p220_p10), %853, %v574_v23   ;;  %v405_v37 = vld [vmem:[%s1124_s2 + $0x8] sm:$0xff] (!%p220_p10)  ;;  %s701_s14 = sshll.u32 (!%p220_p10), %s252_s13, 4  ;;  %vm588_vm13 = vcmask (!%p220_p10), 785408   ;;  %s1074_s27 = scalar_lea.hbm (!%p220_p10), %s1127_s5, %s727_s17 }
  0x12   : > { %v275_v3 = vadd.s32 (!%p220_p10), 8, %v274_v2  ;;  %v277_v4 = vmul.u32 (!%p220_p10), 24, %v269_v1  ;;  %v278_v5 = vmul.u32 (!%p220_p10), 96, %v274_v2  ;;  %v284_v6 = vadd.s32 (!%p220_p10), 1, %v274_v2  ;;  %s254_s15 = scalar_lea.vmem (!%p220_p10), [#allocation2], %s701_s14 }
  0x13   : > { %v276_v7 = vadd.s32 (!%p220_p10), 16, %v274_v2  ;;  %s606_s16 = sshll.u32 (!%p220_p10), %s254_s15, 4  ;;  %s1069_s16 = int_to_ptr.vmem [resolvable:$true] %s606_s16 }
  0x14   : > { %v279_v8 = vmul.u32 (!%p220_p10), 96, %v275_v3  ;;  %vm1033_vm1 = vcmp.le.s32.totalorder (!%p220_p10), %v278_v5, %v277_v4  ;;  %v285_v10 = vadd.s32 (!%p220_p10), 1, %v275_v3  ;;  %v287_v11 = vmul.u32 (!%p220_p10), 96, %v284_v6 }
  0x15   : > { %v280_v13 = vmul.u32 (!%p220_p10), 96, %v276_v7  ;;  %v286_v14 = vadd.s32 (!%p220_p10), 1, %v276_v7  ;;  %583 = vperm.xlu0 (!%p220_p10), %853, %v575_v25  }
  0x16   : > { %s1027_s7 = scalar_select %p255_p11, %s924_s21, 1  ;;  %vm282_vm2 = vcmp.le.s32.totalorder %v279_v8, %v277_v4  ;;  %v288_v15 = vmul.u32 96, %v285_v10  ;;  %vm290_vm3 = vcmp.lt.s32.totalorder %v277_v4, %v287_v11 }
  0x17   : > { %vm293_vm4 = vmand %vm1033_vm1, %vm290_vm3  ;;  %v289_v16 = vmul.u32 96, %v286_v14  ;;  %vm283_vm6 = vcmp.le.s32.totalorder %v280_v13, %v277_v4  ;;  %s854_s21 = scalar_lea.vmem %s1069_s16, 256 }
  0x18   : > { %s726_s8 = sshll.u32 %s1027_s7, 5  ;;  %vm291_vm5 = vcmp.lt.s32.totalorder %v277_v4, %v288_v15  ;;  %s725_s24 = sshll.u32 %s1027_s7, 4 }
  0x19   : > { %s267_s11 = scalar_lea.vmem %s1123_s1, %s726_s8  ;;  %vm294_vm7 = vmand %vm282_vm2, %vm291_vm5  ;;  %vm292_vm8 = vcmp.lt.s32.totalorder %v277_v4, %v289_v16  ;;  %s262_s29 = scalar_lea.vmem %s1122_s0, %s725_s24 }
  0x1a   : > { %v302_v12 = vld [vmem:[%s267_s11] sm:$0xff]  ;;  %vm775_vm9 = vmpackc.low %vm294_vm7, %vm293_vm4  ;;  %v303_v19 = vld [vmem:[%s267_s11 + $0x8] sm:$0xff]  ;;  %p855_p12 = scmp.ne.s32.totalorder %s1069_s16, %s854_s21  ;;  %s937_s7 = smov [#allocation2]  }
  0x1b   : > { %751 = vmatprep.mubr.msk.f32.mxu0 %vm306_vm0, %v302_v12  ;;  %776 = vmatprep.subr.msk.bf16.mxu0 %vm775_vm9, %v934_v17  ;;  %vm295_vm10 = vmand %vm283_vm6, %vm292_vm8  ;;  %v304_v20 = vld [vmem:[%s267_s11 + $0x10] sm:$0xff]  ;;  %v305_v21 = vld [vmem:[%s267_s11 + $0x18] sm:$0xff]  ;;  %s858_s8 = sshll.u32 %s937_s7, 4  ;;  %s859_s8 = int_to_ptr.vmem [resolvable:$false] %s858_s8 }
  0x1c   : > { %778 = vmatpush3.bf16.msk.msra.mxu0 %vm775_vm9, %v934_v17  ;;  %v406_v29 = vld [vmem:[%s262_s29] sm:$0xff]  ;;  %v407_v30 = vld [vmem:[%s262_s29 + $0x8] sm:$0xff]  ;;  %s1076_s29 = scalar_lea.sflag [#allocation3], %s252_s13  ;;  %p856_p13 = pnand %p855_p12, %p1010_p4 }
  0x1d   : > { %749 = vmatprep.subr.msk.mxu0 %vm295_vm10, %v935_v18  ;;  %v787_v34 = vpack.c.bf16 %v407_v30, %v406_v29  ;;  %s860_s9 = scalar_lea.vmem %s859_s8, 512  ;;  %p861_p1 = scmp.lt.s32.totalorder %s1069_s16, %s859_s8 }
  0x1e   : > { %p857_p0 = pneg %p856_p13  ;;  %p862_p2 = scmp.lt.s32.totalorder %s860_s9, %s854_s21 }
  0x20   : > { %750 = vmatpush3.msk.msra.mxu0 %vm295_vm10, %v935_v18  ;;  %p863_p3 = por %p862_p2, %p861_p1 }
  0x21   : > { %752 = vmatmul.mubr.msk.f32.vlgmr.msra.gmra.mrb[0].mxu0 %vm306_vm0, %v303_v19 }
  0x22   : > { %754 = vmatprep.mubr.msk.f32.mxu0 %vm306_vm0, %v304_v20  ;;  %p864_p5 = pnand %p863_p3, %p857_p0 }
  0x25   : > { %755 = vmatmul.mubr.msk.f32.gmra.mrb[2].mxu0 %vm306_vm0, %v305_v21 }
  0x90   : > { %v579_v38 = vpop.permute.xlu0 %578 }
  0x94   : > { %v584_v39 = vpop.permute.xlu0 %583 }
  0xf4   : > { %v753_v26 = vpop.f32.mrb[0].mxu0 }
  0xf5   : > { %v385_v27 = vpop.f32.mrb[1].mxu0 }
  0xf6   : > { %v779_v28 = vpack.c.bf16 %v753_v26, %v385_v27 }
  0xf8   : > { %v756_v31 = vpop.f32.mrb[2].mxu0  ;;  %780 = vmatprep.subr.bf16.mxu1 %v779_v28 }
  0xf9   : > { %v395_v32 = vpop.f32.mrb[3].mxu0  ;;  %782 = vmatpush3.bf16.msra.mxu1 %v779_v28 }
  0xfa   : > { %v783_v33 = vpack.c.bf16 %v756_v31, %v395_v32 }
  0xfc   : > { %784 = vmatprep.subr.bf16.mxu1 %v783_v33 }
  0xfd   : > { %786 = vmatpush3.bf16.msra.mxu1 %v783_v33 }
  0xfe   : > { %788 = vmatprep.subr.bf16.mxu1 %v787_v34 }
 0x100   : > { %766 = vmatmul.mubr.msk.f32.vlgmr.msra.gmra.mrb[0].mxu1 %vm410_vm11, %v409_v35 }
 0x101   : > { %790 = vmatpush3.bf16.msra.mxu1 %v787_v34  ;;  %772 = vmatprep.mubr.msk.f32.mxu1 %vm492_vm12, %v404_v36 }
 0x108   : > { %773 = vmatmul.mubr.msk.f32.vlgmr.msra.gmra.mrb[0].mxu1 %vm492_vm12, %v405_v37 }
 0x1db   : > { %v774_v40 = vpop.f32.mrb[0].mxu1 }
 0x1dc   : > { %v587_v41 = vadd.f32 %v774_v40, %v584_v39  ;;  %v565_v42 = vpop.f32.mrb[1].mxu1 }
 0x1dd   : > { %v586_v43 = vadd.f32 %v579_v38, %v565_v42 }
 0x1de   : > { %590 = vst.msk [vmem:[%s254_s15 + $0x8] sm:$0xff] %vm588_vm13, %v587_v41 }
 0x1df   : > { %589 = vst.msk [vmem:[%s254_s15] sm:$0xff] %vm588_vm13, %v586_v43 }
 0x1e0   : > { %867 = shalt.err (!%p864_p5)
}
 0x1e1   : > { %s868_s10 = scalar_lea.hbm %s1074_s27, 256  ;;  %s872_s13 = scalar_lea.hbm %s1127_s5, 512 }
 0x1e2   : > { %p869_p6 = scmp.ne.s32.totalorder %s1074_s27, %s868_s10  ;;  %p873_p10 = scmp.lt.u32.totalorder %s1074_s27, %s1127_s5 }
 0x1e3   : > { %p874_p11 = scmp.lt.u32.totalorder %s872_s13, %s868_s10  ;;  %p876_p13 = scmp.lt.u32.totalorder %s868_s10, %s1074_s27 }
 0x1e4   : > { %p870_p7 = pnand %p869_p6, %p1010_p4 }
 0x1e5   : > { %p875_p12 = por %p874_p11, %p873_p10 }
 0x1e6   : > { %p871_p9 = pneg %p870_p7 }
 0x1e7   : > { %p877_p0 = por %p876_p13, %p875_p12 }
 0x1e9   : > { %p878_p1 = pnand %p877_p0, %p871_p9 }
 0x1eb   : > { %881 = shalt.err (!%p878_p1)
}
 0x1ec   : > { %s938_s17 = smov 128   ;;  %s939_s24 = smov 8  }
 0x1ed   : > { %793 = dma.vmem_to_hbm [thread:$0]  (%p1010_p4), %s1069_s16, 256, %s1074_s27, %s1076_s29, %s938_s17, %s938_s17, %s939_s24  }
 0x1ee PF: > { %p799_p2 = scmp.ge.s32.totalorder %s932_s23, 2  ;;  %s621_s25 = sand.u32 1, %s912_s18  }
 0x1ef   : > { %s622_s21 = scalar_lea.sflag [#allocation3], %s621_s25 }
 0x1f0   : > { %p796_p3 = pnand %p799_p2, %p1017_p8 }
 0x1f2   : > { %907 = dma.done.wait (!%p796_p3), %s622_s21, 256  }
 0x1f3   : > { %909 = vsyncadd (!%p796_p3), %s622_s21, 4294967040  ;;  %s18_s23 = sadd.s32 1, %s932_s23   ;;  %s1132_s18 = smov %s916_s19 }
 0x1f4   : > { %p15_p5 = scmp.ge.s32.totalorder %s18_s23, 4   ;;  %s1133_s19 = smov %s920_s20 }
 0x1f5   : > { %s1134_s20 = smov %s1023_s6  ;;  %s1135_s21 = smov %s928_s22 }
 0x1f6   : > { %s1136_s22 = smov %s1138_s26  ;;  %17 = sbr.rel (!%p15_p5) target bundleno = 4 (0x4), region = 78 }
 0x1fd   :  { %627 = vsyncpa [#allocation3], 1 }
 0x1fe   :  { %629 = vsyncpa [#allocation3 + $0x1], 1 }

</bundles_post_ra>
